<compile_context>
chip_gen: v7x
topology: tpu7x:2x2x1
jax: 0.10.0
libtpu: 0.0.40
codegen_flags: <defaults>
</compile_context>

<pallas_src>
import jax
import jax.numpy as jnp
from jax.experimental import pallas as pl
from jax.experimental.pallas import tpu as pltpu


def _round_up(x, m):
    return ((x + m - 1) // m) * m


def _choose_tile_rows(n_rows, n_cols, itemsize, max_tile_rows):
    """Pick a row-tile size: ~4 MiB per pred tile, multiple of 8, <= max_tile_rows.

    4 MiB * 2 (double buffering) + the tiny target tile stays well under the scoped
    VMEM limit on every generation (v5e default 16 MiB, v6e/v7x 32 MiB scoped).
    """
    budget_bytes = 4 * 1024 * 1024
    row_bytes = max(1, n_cols * itemsize)
    rows = budget_bytes // row_bytes
    rows = max(8, min(rows, max_tile_rows, _round_up(n_rows, 8)))
    return max(8, (rows // 8) * 8)


def _make_nll_kernel(inv_n):
    """Build the kernel with 1/N baked in as a compile-time constant."""

    def kernel(pred_ref, tgt_ref, out_ref, acc_ref):
        step = pl.program_id(0)

        @pl.when(step == 0)
        def _init():
            acc_ref[...] = jnp.zeros_like(acc_ref)

        # Load in native dtype, upcast in-register (free on the VPU; avoids a
        # wrapper-side f32 copy through HBM for bf16 inputs).
        pred = pred_ref[...].astype(jnp.float32)      # (TILE_N, C)
        tgt = tgt_ref[...]                            # (TILE_N, 1) int32
        col = jax.lax.broadcasted_iota(jnp.int32, pred.shape, 1)
        # Masked select instead of one-hot multiply: safe for -inf log-probs and
        # needs only one full reduce per tile.
        picked = jnp.where(col == tgt, pred, jnp.float32(0.0))
        acc_ref[...] = acc_ref[...] + jnp.sum(picked)

        @pl.when(step == pl.num_programs(0) - 1)
        def _finalize():
            # Single scalar store; mean uses the true N via the hoisted constant.
            out_ref[...] = -acc_ref[...] * jnp.float32(inv_n)

    return kernel


def get_loss_pallas(pred, target, trans_feat=None, *, max_tile_rows=2048):
    """Equivalent of F.nll_loss(pred, target) with mean reduction (trans_feat unused)."""
    del trans_feat  # unused, as in the PyTorch module
    n, c = pred.shape
    itemsize = jnp.dtype(pred.dtype).itemsize

    tile_rows = _choose_tile_rows(n, c, itemsize, max_tile_rows)
    padded_n = _round_up(n, tile_rows)
    num_tiles = padded_n // tile_rows

    tgt2d = target.astype(jnp.int32).reshape(n, 1)
    if padded_n != n:
        # Zero-pad the ragged tail: padded pred rows are all-zero and padded targets
        # are class 0, so each padded row contributes exactly 0.0 to the sum.
        pred = jnp.pad(pred, ((0, padded_n - n), (0, 0)))
        tgt2d = jnp.pad(tgt2d, ((0, padded_n - n), (0, 0)))

    kernel = _make_nll_kernel(1.0 / n)

    out = pl.pallas_call(
        kernel,
        out_shape=jax.ShapeDtypeStruct((1, 1), jnp.float32),
        grid_spec=pltpu.PrefetchScalarGridSpec(
            num_scalar_prefetch=0,
            grid=(num_tiles,),
            in_specs=[
                pl.BlockSpec((tile_rows, c), lambda i: (i, 0)),   # pred row tile
                pl.BlockSpec((tile_rows, 1), lambda i: (i, 0)),   # target row tile
            ],
            out_specs=pl.BlockSpec((1, 1), lambda i: (0, 0)),     # resident scalar
            scratch_shapes=[pltpu.VMEM((1, 1), jnp.float32)],     # running sum
        ),
        compiler_params=pltpu.CompilerParams(
            dimension_semantics=("arbitrary",),                   # N is a reduction axis
        ),
        cost_estimate=pl.CostEstimate(
            flops=2 * padded_n * c,
            transcendentals=0,
            bytes_accessed=padded_n * c * itemsize + padded_n * 4 + 4,
        ),
    )(pred, tgt2d)
    return out[0, 0]


if __name__ == "__main__":
    key = jax.random.PRNGKey(0)
    k1, k2, k3, k4, k5 = jax.random.split(key, 5)

    # --- Case 1: small f32 case matching the module's classification head -------
    N, C = 8, 16
    logits = jax.random.normal(k1, (N, C), dtype=jnp.float32)
    pred = jax.nn.log_softmax(logits, axis=-1)
    target = jax.random.randint(k2, (N,), 0, C, dtype=jnp.int32)
    trans_feat = jax.random.normal(k3, (N, 64, 64), dtype=jnp.float32)  # unused

    loss = get_loss_pallas(pred, target, trans_feat)
    jax.block_until_ready(loss)
    ref = -jnp.mean(pred[jnp.arange(N), target])
    assert jnp.allclose(loss, ref, atol=1e-6, rtol=1e-6), (loss, ref)

    # --- Case 2: ragged N + bf16 input, forced small tile to exercise the grid,
    #             accumulator, padding and in-register upcast paths --------------
    N2, C2 = 41, 24
    logits2 = jax.random.normal(k4, (N2, C2), dtype=jnp.float32)
    pred2 = jax.nn.log_softmax(logits2, axis=-1).astype(jnp.bfloat16)
    target2 = jax.random.randint(k5, (N2,), 0, C2, dtype=jnp.int32)

    loss2 = get_loss_pallas(pred2, target2, None, max_tile_rows=8)
    jax.block_until_ready(loss2)
    ref2 = -jnp.mean(pred2.astype(jnp.float32)[jnp.arange(N2), target2])
    assert jnp.allclose(loss2, ref2, atol=1e-5, rtol=1e-5), (loss2, ref2)

    print("KERNEL_OK")
</pallas_src>

<mosaic_0001>
module attributes {stable_mosaic.version = 11 : i64} {
  func.func @kernel(%arg0: i32, %arg1: memref<8x16xf32, #tpu.memory_space<vmem>>, %arg2: memref<8x1xi32, #tpu.memory_space<vmem>>, %arg3: memref<1x1xf32, #tpu.memory_space<vmem>>, %arg4: memref<1x1xf32, #tpu.memory_space<vmem>>) attributes {dimension_semantics = [#tpu.dimension_semantics<arbitrary>], iteration_bounds = array<i64: 1>, scalar_prefetch = 0 : i64, scratch_operands = 1 : i64, tpu.core_type = #tpu.core_type<tc>, window_params = [{transform_indices = @transform_0, window_bounds = array<i64: 8, 16>}, {transform_indices = @transform_1, window_bounds = array<i64: 8, 1>}, {pipeline_mode = #tpu.pipeline_mode<synchronous>, transform_indices = @transform_2, window_bounds = array<i64: 1, 1>}]} {
    %c0_i32 = arith.constant 0 : i32
    %0 = arith.cmpi eq, %arg0, %c0_i32 : i32
    %1 = arith.extui %0 : i1 to i32
    %c0_i32_0 = arith.constant 0 : i32
    %2 = arith.cmpi ne, %1, %c0_i32_0 : i32
    scf.if %2 {
      %cst_11 = arith.constant 0.000000e+00 : f32
      %21 = vector.broadcast %cst_11 : f32 to vector<1x1xf32>
      %c0_12 = arith.constant 0 : index
      %c0_13 = arith.constant 0 : index
      %22 = vector.load %arg4[%c0_12, %c0_13] : memref<1x1xf32, #tpu.memory_space<vmem>>, vector<1x1xf32>
      tpu.vector_store %arg4[%c0_12, %c0_13], %21 {strides = array<i32>} : memref<1x1xf32, #tpu.memory_space<vmem>>, vector<1x1xf32>,
    } else {
    }
    %c0 = arith.constant 0 : index
    %c0_1 = arith.constant 0 : index
    %3 = vector.load %arg1[%c0, %c0_1] : memref<8x16xf32, #tpu.memory_space<vmem>>, vector<8x16xf32>
    %c0_2 = arith.constant 0 : index
    %c0_3 = arith.constant 0 : index
    %4 = vector.load %arg2[%c0_2, %c0_3] : memref<8x1xi32, #tpu.memory_space<vmem>>, vector<8x1xi32>
    %5 = tpu.iota {dimensions = array<i32: 1>} : vector<8x16xi32>
    %6 = vector.broadcast %4 : vector<8x1xi32> to vector<8x16xi32>
    %7 = arith.cmpi eq, %5, %6 : vector<8x16xi32>
    %cst = arith.constant 0.000000e+00 : f32
    %8 = vector.broadcast %cst : f32 to vector<8x16xf32>
    %9 = arith.select %7, %3, %8 : vector<8x16xi1>, vector<8x16xf32>
    %c0_4 = arith.constant 0 : index
    %c0_5 = arith.constant 0 : index
    %10 = vector.load %arg4[%c0_4, %c0_5] : memref<1x1xf32, #tpu.memory_space<vmem>>, vector<1x1xf32>
    %11 = vector.shape_cast %9 : vector<8x16xf32> to vector<1x8x16xf32>
    %cst_6 = arith.constant dense<0.000000e+00> : vector<1xf32>
    %12 = vector.multi_reduction <add>, %11, %cst_6 [1, 2] : vector<1x8x16xf32> to vector<1xf32>
    %13 = vector.shape_cast %12 : vector<1xf32> to vector<1x1x1xf32>
    %14 = vector.extract %13[0, 0, 0] : f32 from vector<1x1x1xf32>
    %15 = vector.broadcast %14 : f32 to vector<1x1xf32>
    %16 = arith.addf %10, %15 : vector<1x1xf32>
    %c0_7 = arith.constant 0 : index
    %c0_8 = arith.constant 0 : index
    %17 = vector.load %arg4[%c0_7, %c0_8] : memref<1x1xf32, #tpu.memory_space<vmem>>, vector<1x1xf32>
    tpu.vector_store %arg4[%c0_7, %c0_8], %16 {strides = array<i32>} : memref<1x1xf32, #tpu.memory_space<vmem>>, vector<1x1xf32>,
    %c0_i32_9 = arith.constant 0 : i32
    %18 = arith.cmpi eq, %arg0, %c0_i32_9 : i32
    %19 = arith.extui %18 : i1 to i32
    %c0_i32_10 = arith.constant 0 : i32
    %20 = arith.cmpi ne, %19, %c0_i32_10 : i32
    scf.if %20 {
      %c0_11 = arith.constant 0 : index
      %c0_12 = arith.constant 0 : index
      %21 = vector.load %arg4[%c0_11, %c0_12] : memref<1x1xf32, #tpu.memory_space<vmem>>, vector<1x1xf32>
      %cst_13 = arith.constant 0.000000e+00 : f32
      %22 = vector.broadcast %cst_13 : f32 to vector<1x1xf32>
      %23 = arith.subf %22, %21 : vector<1x1xf32>
      %cst_14 = arith.constant 1.250000e-01 : f32
      %24 = vector.broadcast %cst_14 : f32 to vector<1x1xf32>
      %25 = arith.mulf %23, %24 : vector<1x1xf32>
      %c0_15 = arith.constant 0 : index
      %c0_16 = arith.constant 0 : index
      %26 = vector.load %arg3[%c0_15, %c0_16] : memref<1x1xf32, #tpu.memory_space<vmem>>, vector<1x1xf32>
      tpu.vector_store %arg3[%c0_15, %c0_16], %25 {strides = array<i32>} : memref<1x1xf32, #tpu.memory_space<vmem>>, vector<1x1xf32>,
    } else {
    }
    return
  }
  func.func @transform_0(%arg0: i32) -> (i32, i32) {
    %c0_i32 = arith.constant 0 : i32
    %c0_i32_0 = arith.constant 0 : i32
    return %arg0, %c0_i32 : i32, i32
  }
  func.func @transform_1(%arg0: i32) -> (i32, i32) {
    %c0_i32 = arith.constant 0 : i32
    %c0_i32_0 = arith.constant 0 : i32
    return %arg0, %c0_i32 : i32, i32
  }
  func.func @transform_2(%arg0: i32) -> (i32, i32) {
    %c0_i32 = arith.constant 0 : i32
    %c0_i32_0 = arith.constant 0 : i32
    %c0_i32_1 = arith.constant 0 : i32
    return %c0_i32, %c0_i32_0 : i32, i32
  }
}

</mosaic_0001>

<bundles_post_ra>
// kernel: tpu_custom_call.1
= control target key start
LH: loop header
LB: loop body
LE: loop exit
PB: predicated region body
PF: predicated region fallthrough
CT: control target
= control target key end

     0   :  { %s133_s0 = inlined_call_operand.vmem [shape: f32[8,16], index: 0, kind: input, shape index: {}]   ;;  %s134_s1 = inlined_call_operand.vmem [shape: s32[8,1], index: 1, kind: input, shape index: {}]   ;;  %s135_s2 = inlined_call_operand.hbm [shape: f32[1,1], index: 2, kind: output, shape index: {}]  }
   0x1   :  { %v19_v0 = vld [vmem:[%s134_s1] sm:$0xff] }
   0x2   :  { %7 = vsyncpa [#allocation4], 0  ;;  %v94_v1 = vmov 0   ;;  %v20_v2 = vlaneseq  ;;  %v18_v4 = vld [vmem:[%s133_s0] sm:$0xff]  ;;  %vm28_vm0 = vcmask 130048   ;;  %vm16_vm2 = vcmask 0  }
   0x3   :  { %69 = vset.pattern.permute.xlu0 %v94_v1  ;;  %v95_v8 = vmov 0.0   ;;  %s96_s1 = smov [#allocation3]  }
   0x4   :  { %23 = vperm.xlu0 %69, %v19_v0   ;;  %v21_v3 = vand.u32 127, %v20_v2  ;;  %17 = vst.msk [vmem:[#allocation2] sm:$0x1] %vm16_vm2, %v95_v8  ;;  %s56_s13 = sshll.u32 %s96_s1, 4  ;;  %s57_s13 = int_to_ptr.vmem [resolvable:$true] %s56_s13 }
   0x5   :  { %s70_s14 = scalar_lea.vmem %s57_s13, 16  ;;  %s74_s15 = scalar_lea.vmem %s57_s13, 32 }
   0x6   :  { %p71_p0 = scmp.ne.s32.totalorder %s57_s13, %s70_s14  ;;  %p75_p1 = scmp.lt.s32.totalorder %s57_s13, %s57_s13 }
   0x7   :  { %p76_p2 = scmp.lt.s32.totalorder %s74_s15, %s70_s14 }
   0x9   :  { %p77_p3 = por %p76_p2, %p75_p1 }
   0xb   :  { %v27_v16 = vld [vmem:[#allocation2] sm:$0x1]  ;;  %p78_p4 = pnand %p77_p3, %p71_p0 }
  0x83   :  { %v24_v5 = vpop.permute.xlu0 %23 }
  0x84   :  { %vm25_vm1 = vcmp.eq.s32.totalorder %v21_v3, %v24_v5 }
  0x85   :  { %v26_v6 = vsel %vm25_vm1, %v18_v4, 0.0 }
  0x86   :  { %v29_v7 = vsel %vm28_vm0, %v26_v6, 0.0 }
  0x87   :  { %30 = vadd.xlane.f32.xlu0 %v29_v7 }
 0x114   :  { %v31_v9 = vpop.xlane.xlu0 %30 }
 0x115   :  { %v32_v10 = vrot.slane %v31_v9, 4 }
 0x117   :  { %v33_v11 = vadd.f32 %v32_v10, %v31_v9 }
 0x119   :  { %v34_v12 = vrot.slane %v33_v11, 2 }
 0x11b   :  { %v35_v13 = vadd.f32 %v34_v12, %v33_v11 }
 0x11d   :  { %v36_v14 = vrot.slane %v35_v13, 1 }
 0x11f   :  { %v37_v15 = vadd.f32 %v36_v14, %v35_v13 }
 0x121   :  { %64 = vpush %v37_v15 }
 0x152   :  { %s65_s0 = spop %64 }
 0x153   :  { %v39_v17 = vstv %s65_s0 }
 0x154   :  { %v40_v18 = vadd.f32 %v39_v17, %v27_v16 }
 0x156   :  { %42 = vst.msk [vmem:[#allocation2] sm:$0x1] %vm16_vm2, %v40_v18 }
 0x15d   :  { %v46_v19 = vld [vmem:[#allocation2] sm:$0x1] }
 0x15e   :  { %v47_v20 = vsub.f32 0.0, %v46_v19 }
 0x160   :  { %v48_v21 = vmul.f32 0.125, %v47_v20 }
 0x162   :  { %49 = vst.msk [vmem:[#allocation3] sm:$0x1] %vm16_vm2, %v48_v21 }
 0x163   :  { %81 = shalt.err (!%p78_p4)
}
 0x164   :  { %s82_s18 = scalar_lea.hbm %s135_s2, 16 }
 0x165   :  { %p83_p5 = scmp.ne.s32.totalorder %s135_s2, %s82_s18  ;;  %p86_p6 = scmp.lt.u32.totalorder %s82_s18, %s135_s2 }
 0x167   :  { %p88_p7 = pnand %p86_p6, %p83_p5 }
 0x169   :  { %91 = shalt.err (!%p88_p7)
}
 0x16a   :  { %59 = dma.vmem_to_hbm [thread:$0]  %s57_s13, 16, %s135_s2, [#allocation4]  }
 0x16b   :  { %92 = dma.done.wait [#allocation4], 16  }
 0x16c   :  { %93 = vsyncadd [#allocation4], 4294967280 }
 0x16d   :  { %63 = vsyncpa [#allocation4], 1 }

</bundles_post_ra>
